<compile_context>
chip_gen: v7x
topology: tpu7x:2x2x1
jax: 0.10.0
libtpu: 0.0.40
codegen_flags: <defaults>
</compile_context>

<pallas_src>
import functools
from math import sqrt

import jax
import jax.numpy as jnp
from jax.experimental import pallas as pl
from jax.experimental.pallas import tpu as pltpu


def _round_up(x, m):
    return (x + m - 1) // m * m


def _flash_attn_kernel(n_actual, dk_p, norm_fact, mask_kv,
                       xq_ref, xkv_ref, wq_ref, wkv_ref, o_ref,
                       q_scr, m_scr, l_scr, acc_scr):
    ki = pl.program_id(2)

    # New query tile: project q once (scale folded in), reset online-softmax state.
    @pl.when(ki == 0)
    def _init():
        xq = xq_ref[0]                                            # (tq, dim_in) bf16
        q = jnp.dot(xq, wq_ref[...], preferred_element_type=jnp.float32)
        q_scr[...] = (q * norm_fact).astype(q_scr.dtype)          # bf16, pre-scaled
        m_scr[...] = jnp.full_like(m_scr, -jnp.inf)
        l_scr[...] = jnp.zeros_like(l_scr)
        acc_scr[...] = jnp.zeros_like(acc_scr)

    # Fused K|V projection for this KV tile: one wide MXU matmul, lane-aligned split.
    xkv = xkv_ref[0]                                              # (tkv, dim_in) bf16
    kv = jnp.dot(xkv, wkv_ref[...], preferred_element_type=jnp.float32)
    k = kv[:, :dk_p].astype(jnp.bfloat16)                         # (tkv, dk_p)
    v = kv[:, dk_p:].astype(jnp.bfloat16)                         # (tkv, dv_p)

    # Scores: contract last dims directly (no explicit transpose).
    s = jax.lax.dot_general(q_scr[...], k, (((1,), (1,)), ((), ())),
                            preferred_element_type=jnp.float32)   # (tq, tkv)

    if mask_kv:
        tkv = k.shape[0]
        kv_pos = ki * tkv + jax.lax.broadcasted_iota(jnp.int32, s.shape, 1)
        s = jnp.where(kv_pos < n_actual, s, jnp.float32(-1e30))

    # Online softmax update.
    m_prev = m_scr[...]
    m_new = jnp.maximum(m_prev, jnp.max(s, axis=-1, keepdims=True))
    alpha = jnp.exp(m_prev - m_new)
    p = jnp.exp(s - m_new)
    l_scr[...] = alpha * l_scr[...] + jnp.sum(p, axis=-1, keepdims=True)
    acc_scr[...] = alpha * acc_scr[...] + jnp.dot(
        p.astype(jnp.bfloat16), v, preferred_element_type=jnp.float32)
    m_scr[...] = m_new

    @pl.when(ki == pl.num_programs(2) - 1)
    def _finalize():
        inv_l = pl.reciprocal(l_scr[...], approx=True)
        o_ref[0] = (acc_scr[...] * inv_l).astype(o_ref.dtype)


def self_attention(x, wq, wk, wv, *, tile=128):
    """x: (batch, n, dim_in); wq/wk: (dim_in, dim_k); wv: (dim_in, dim_v)."""
    batch, n, dim_in = x.shape
    dim_k = wq.shape[1]
    dim_v = wv.shape[1]
    out_dtype = x.dtype

    # Lane-dense head dims (multiple of 128) so in-kernel slices are lane-aligned
    # and the output block stores full vregs.
    dk_p = _round_up(dim_k, 128)
    dv_p = _round_up(dim_v, 128)

    # One tile size for both q and kv axes; multiple of 8 (sublane), <= 128.
    t = min(tile, _round_up(n, 8))
    n_pad = _round_up(n, t)

    x_p = x if n_pad == n else jnp.pad(x, ((0, 0), (0, n_pad - n), (0, 0)))
    x_bf = x_p.astype(jnp.bfloat16)

    wq_p = jnp.pad(wq, ((0, 0), (0, dk_p - dim_k))).astype(jnp.bfloat16)
    wk_p = jnp.pad(wk, ((0, 0), (0, dk_p - dim_k)))
    wv_p = jnp.pad(wv, ((0, 0), (0, dv_p - dim_v)))
    wkv_p = jnp.concatenate([wk_p, wv_p], axis=1).astype(jnp.bfloat16)

    norm_fact = 1.0 / sqrt(dim_k)
    mask_kv = (n_pad != n)

    kernel = functools.partial(_flash_attn_kernel, n, dk_p, norm_fact, mask_kv)

    grid = (batch, n_pad // t, n_pad // t)

    out = pl.pallas_call(
        kernel,
        out_shape=jax.ShapeDtypeStruct((batch, n_pad, dv_p), out_dtype),
        grid_spec=pltpu.PrefetchScalarGridSpec(
            num_scalar_prefetch=0,
            grid=grid,
            in_specs=[
                pl.BlockSpec((1, t, dim_in), lambda b, qi, ki: (b, qi, 0)),   # query rows
                pl.BlockSpec((1, t, dim_in), lambda b, qi, ki: (b, ki, 0)),   # kv rows
                pl.BlockSpec((dim_in, dk_p), lambda b, qi, ki: (0, 0)),       # Wq
                pl.BlockSpec((dim_in, dk_p + dv_p), lambda b, qi, ki: (0, 0)),# Wk|Wv fused
            ],
            out_specs=pl.BlockSpec((1, t, dv_p), lambda b, qi, ki: (b, qi, 0)),
            scratch_shapes=[
                pltpu.VMEM((t, dk_p), jnp.bfloat16),   # q (pre-scaled)
                pltpu.VMEM((t, 1), jnp.float32),       # m (running max)
                pltpu.VMEM((t, 1), jnp.float32),       # l (running denom)
                pltpu.VMEM((t, dv_p), jnp.float32),    # acc
            ],
        ),
        compiler_params=pltpu.CompilerParams(
            dimension_semantics=("parallel", "parallel", "arbitrary"),
        ),
    )(x_bf, x_bf, wq_p, wkv_p)

    return out[:, :n, :dim_v]


def self_attention_ref(x, wq, wk, wv):
    """Pure-JAX f32 reference matching the PyTorch forward."""
    q = jnp.einsum("bnd,dk->bnk", x, wq)
    k = jnp.einsum("bnd,dk->bnk", x, wk)
    v = jnp.einsum("bnd,dv->bnv", x, wv)
    dist = jnp.einsum("bik,bjk->bij", q, k) / sqrt(wq.shape[1])
    dist = jax.nn.softmax(dist, axis=-1)
    return jnp.einsum("bij,bjv->biv", dist, v)


def _run_case(key, batch, n, dim_in, dim_k, dim_v):
    kx, kq, kk, kv = jax.random.split(key, 4)
    x = jax.random.normal(kx, (batch, n, dim_in), dtype=jnp.float32)

    # nn.Linear(dim_in, dim_out, bias=False) init: U(-1/sqrt(fan_in), 1/sqrt(fan_in)).
    bound = 1.0 / sqrt(dim_in)
    wq_t = jax.random.uniform(kq, (dim_k, dim_in), jnp.float32, -bound, bound)
    wk_t = jax.random.uniform(kk, (dim_k, dim_in), jnp.float32, -bound, bound)
    wv_t = jax.random.uniform(kv, (dim_v, dim_in), jnp.float32, -bound, bound)
    wq, wk, wv = wq_t.T, wk_t.T, wv_t.T   # (dim_in, dim_out)

    out = jax.block_until_ready(self_attention(x, wq, wk, wv))
    ref = self_attention_ref(x, wq, wk, wv)

    assert out.shape == (batch, n, dim_v)
    # bf16 MXU operands + approx reciprocal -> compare with loose tolerance.
    assert jnp.allclose(out, ref, atol=2e-2, rtol=2e-2), (
        f"mismatch vs reference, max abs err = {jnp.max(jnp.abs(out - ref))}")


if __name__ == "__main__":
    key = jax.random.PRNGKey(0)
    k1, k2 = jax.random.split(key)

    # Small shape consistent with the module (batch=2, seq=8, dim_in=32, dim_k=dim_v=16).
    _run_case(k1, batch=2, n=8, dim_in=32, dim_k=16, dim_v=16)

    # Non-aligned shape exercising tiling + KV masking (n padded 200 -> 256, 2x2 tiles).
    _run_case(k2, batch=2, n=200, dim_in=48, dim_k=24, dim_v=40)

    print("KERNEL_OK")
</pallas_src>

<mosaic_0001>
module attributes {stable_mosaic.version = 11 : i64} {
  func.func @_flash_attn_kernel(%arg0: i32, %arg1: i32, %arg2: i32, %arg3: memref<1x8x32xbf16, #tpu.memory_space<vmem>>, %arg4: memref<1x8x32xbf16, #tpu.memory_space<vmem>>, %arg5: memref<32x128xbf16, #tpu.memory_space<vmem>>, %arg6: memref<32x256xbf16, #tpu.memory_space<vmem>>, %arg7: memref<1x8x128xf32, #tpu.memory_space<vmem>>, %arg8: memref<8x128xbf16, #tpu.memory_space<vmem>>, %arg9: memref<8x1xf32, #tpu.memory_space<vmem>>, %arg10: memref<8x1xf32, #tpu.memory_space<vmem>>, %arg11: memref<8x128xf32, #tpu.memory_space<vmem>>) attributes {dimension_semantics = [#tpu.dimension_semantics<parallel>, #tpu.dimension_semantics<parallel>, #tpu.dimension_semantics<arbitrary>], iteration_bounds = array<i64: 2, 1, 1>, scalar_prefetch = 0 : i64, scratch_operands = 4 : i64, tpu.core_type = #tpu.core_type<tc>, window_params = [{transform_indices = @transform_0, window_bounds = array<i64: 1, 8, 32>}, {transform_indices = @transform_1, window_bounds = array<i64: 1, 8, 32>}, {pipeline_mode = #tpu.pipeline_mode<synchronous>, transform_indices = @transform_2, window_bounds = array<i64: 32, 128>}, {pipeline_mode = #tpu.pipeline_mode<synchronous>, transform_indices = @transform_3, window_bounds = array<i64: 32, 256>}, {transform_indices = @transform_4, window_bounds = array<i64: 1, 8, 128>}]} {
    %c0_i32 = arith.constant 0 : i32
    %0 = arith.cmpi eq, %arg2, %c0_i32 : i32
    %1 = arith.extui %0 : i1 to i32
    %c0_i32_0 = arith.constant 0 : i32
    %2 = arith.cmpi ne, %1, %c0_i32_0 : i32
    scf.if %2 {
      %c0_25 = arith.constant 0 : index
      %c0_26 = arith.constant 0 : index
      %c0_27 = arith.constant 0 : index
      %39 = vector.load %arg3[%c0_25, %c0_26, %c0_27] : memref<1x8x32xbf16, #tpu.memory_space<vmem>>, vector<1x8x32xbf16>
      %40 = vector.shape_cast %39 : vector<1x8x32xbf16> to vector<8x32xbf16>
      %c0_28 = arith.constant 0 : index
      %c0_29 = arith.constant 0 : index
      %41 = vector.load %arg5[%c0_28, %c0_29] : memref<32x128xbf16, #tpu.memory_space<vmem>>, vector<32x128xbf16>
      %cst_30 = arith.constant dense<0.000000e+00> : vector<8x128xf32>
      %42 = tpu.matmul %40, %41, %cst_30 {dimension_numbers = #tpu.dot_dimension_numbers<[1], [0], [0], [1], [0, 0, 1, 1], [], []>} : vector<8x32xbf16>, vector<32x128xbf16>, vector<8x128xf32> -> vector<8x128xf32>
      %cst_31 = arith.constant 2.500000e-01 : f32
      %43 = vector.broadcast %cst_31 : f32 to vector<8x128xf32>
      %44 = arith.mulf %42, %43 : vector<8x128xf32>
      %45 = arith.truncf %44 : vector<8x128xf32> to vector<8x128xbf16>
      %c0_32 = arith.constant 0 : index
      %c0_33 = arith.constant 0 : index
      %46 = vector.load %arg8[%c0_32, %c0_33] : memref<8x128xbf16, #tpu.memory_space<vmem>>, vector<8x128xbf16>
      tpu.vector_store %arg8[%c0_32, %c0_33], %45 {strides = array<i32>} : memref<8x128xbf16, #tpu.memory_space<vmem>>, vector<8x128xbf16>,
      %cst_34 = arith.constant 0xFF800000 : f32
      %47 = vector.broadcast %cst_34 : f32 to vector<8x1xf32>
      %c0_35 = arith.constant 0 : index
      %c0_36 = arith.constant 0 : index
      %48 = vector.load %arg9[%c0_35, %c0_36] : memref<8x1xf32, #tpu.memory_space<vmem>>, vector<8x1xf32>
      tpu.vector_store %arg9[%c0_35, %c0_36], %47 {strides = array<i32>} : memref<8x1xf32, #tpu.memory_space<vmem>>, vector<8x1xf32>,
      %cst_37 = arith.constant 0.000000e+00 : f32
      %49 = vector.broadcast %cst_37 : f32 to vector<8x1xf32>
      %c0_38 = arith.constant 0 : index
      %c0_39 = arith.constant 0 : index
      %50 = vector.load %arg10[%c0_38, %c0_39] : memref<8x1xf32, #tpu.memory_space<vmem>>, vector<8x1xf32>
      tpu.vector_store %arg10[%c0_38, %c0_39], %49 {strides = array<i32>} : memref<8x1xf32, #tpu.memory_space<vmem>>, vector<8x1xf32>,
      %cst_40 = arith.constant 0.000000e+00 : f32
      %51 = vector.broadcast %cst_40 : f32 to vector<8x128xf32>
      %c0_41 = arith.constant 0 : index
      %c0_42 = arith.constant 0 : index
      %52 = vector.load %arg11[%c0_41, %c0_42] : memref<8x128xf32, #tpu.memory_space<vmem>>, vector<8x128xf32>
      tpu.vector_store %arg11[%c0_41, %c0_42], %51 {strides = array<i32>} : memref<8x128xf32, #tpu.memory_space<vmem>>, vector<8x128xf32>,
    } else {
    }
    %c0 = arith.constant 0 : index
    %c0_1 = arith.constant 0 : index
    %c0_2 = arith.constant 0 : index
    %3 = vector.load %arg4[%c0, %c0_1, %c0_2] : memref<1x8x32xbf16, #tpu.memory_space<vmem>>, vector<1x8x32xbf16>
    %4 = vector.shape_cast %3 : vector<1x8x32xbf16> to vector<8x32xbf16>
    %c0_3 = arith.constant 0 : index
    %c0_4 = arith.constant 0 : index
    %5 = vector.load %arg6[%c0_3, %c0_4] : memref<32x256xbf16, #tpu.memory_space<vmem>>, vector<32x256xbf16>
    %cst = arith.constant dense<0.000000e+00> : vector<8x256xf32>
    %6 = tpu.matmul %4, %5, %cst {dimension_numbers = #tpu.dot_dimension_numbers<[1], [0], [0], [1], [0, 0, 1, 1], [], []>} : vector<8x32xbf16>, vector<32x256xbf16>, vector<8x256xf32> -> vector<8x256xf32>
    %7 = vector.extract_strided_slice %6 {offsets = [0, 0], sizes = [8, 128], strides = [1, 1]} : vector<8x256xf32> to vector<8x128xf32>
    %8 = arith.truncf %7 : vector<8x128xf32> to vector<8x128xbf16>
    %9 = vector.extract_strided_slice %6 {offsets = [0, 128], sizes = [8, 128], strides = [1, 1]} : vector<8x256xf32> to vector<8x128xf32>
    %10 = arith.truncf %9 : vector<8x128xf32> to vector<8x128xbf16>
    %c0_5 = arith.constant 0 : index
    %c0_6 = arith.constant 0 : index
    %11 = vector.load %arg8[%c0_5, %c0_6] : memref<8x128xbf16, #tpu.memory_space<vmem>>, vector<8x128xbf16>
    %cst_7 = arith.constant dense<0.000000e+00> : vector<8x8xf32>
    %12 = tpu.matmul %11, %8, %cst_7 {dimension_numbers = #tpu.dot_dimension_numbers<[1], [1], [0], [0], [0, 0, 1, 0], [], []>} : vector<8x128xbf16>, vector<8x128xbf16>, vector<8x8xf32> -> vector<8x8xf32>
    %c0_8 = arith.constant 0 : index
    %c0_9 = arith.constant 0 : index
    %13 = vector.load %arg9[%c0_8, %c0_9] : memref<8x1xf32, #tpu.memory_space<vmem>>, vector<8x1xf32>
    %cst_10 = arith.constant dense<0xFF800000> : vector<8xf32>
    %14 = vector.multi_reduction <maximumf>, %12, %cst_10 [1] : vector<8x8xf32> to vector<8xf32>
    %15 = vector.shape_cast %14 : vector<8xf32> to vector<8x1xf32>
    %16 = arith.maximumf %13, %15 : vector<8x1xf32>
    %17 = arith.subf %13, %16 : vector<8x1xf32>
    %18 = math.exp %17 : vector<8x1xf32>
    %19 = vector.broadcast %16 : vector<8x1xf32> to vector<8x8xf32>
    %20 = arith.subf %12, %19 : vector<8x8xf32>
    %21 = math.exp %20 : vector<8x8xf32>
    %c0_11 = arith.constant 0 : index
    %c0_12 = arith.constant 0 : index
    %22 = vector.load %arg10[%c0_11, %c0_12] : memref<8x1xf32, #tpu.memory_space<vmem>>, vector<8x1xf32>
    %23 = arith.mulf %18, %22 : vector<8x1xf32>
    %cst_13 = arith.constant dense<0.000000e+00> : vector<8xf32>
    %24 = vector.multi_reduction <add>, %21, %cst_13 [1] : vector<8x8xf32> to vector<8xf32>
    %25 = vector.shape_cast %24 : vector<8xf32> to vector<8x1xf32>
    %26 = arith.addf %23, %25 : vector<8x1xf32>
    %c0_14 = arith.constant 0 : index
    %c0_15 = arith.constant 0 : index
    %27 = vector.load %arg10[%c0_14, %c0_15] : memref<8x1xf32, #tpu.memory_space<vmem>>, vector<8x1xf32>
    tpu.vector_store %arg10[%c0_14, %c0_15], %26 {strides = array<i32>} : memref<8x1xf32, #tpu.memory_space<vmem>>, vector<8x1xf32>,
    %c0_16 = arith.constant 0 : index
    %c0_17 = arith.constant 0 : index
    %28 = vector.load %arg11[%c0_16, %c0_17] : memref<8x128xf32, #tpu.memory_space<vmem>>, vector<8x128xf32>
    %29 = vector.broadcast %18 : vector<8x1xf32> to vector<8x128xf32>
    %30 = arith.mulf %29, %28 : vector<8x128xf32>
    %31 = arith.truncf %21 : vector<8x8xf32> to vector<8x8xbf16>
    %cst_18 = arith.constant dense<0.000000e+00> : vector<8x128xf32>
    %32 = tpu.matmul %31, %10, %cst_18 {dimension_numbers = #tpu.dot_dimension_numbers<[1], [0], [0], [1], [0, 0, 1, 1], [], []>} : vector<8x8xbf16>, vector<8x128xbf16>, vector<8x128xf32> -> vector<8x128xf32>
    %33 = arith.addf %30, %32 : vector<8x128xf32>
    %c0_19 = arith.constant 0 : index
    %c0_20 = arith.constant 0 : index
    %34 = vector.load %arg11[%c0_19, %c0_20] : memref<8x128xf32, #tpu.memory_space<vmem>>, vector<8x128xf32>
    tpu.vector_store %arg11[%c0_19, %c0_20], %33 {strides = array<i32>} : memref<8x128xf32, #tpu.memory_space<vmem>>, vector<8x128xf32>,
    %c0_21 = arith.constant 0 : index
    %c0_22 = arith.constant 0 : index
    %35 = vector.load %arg9[%c0_21, %c0_22] : memref<8x1xf32, #tpu.memory_space<vmem>>, vector<8x1xf32>
    tpu.vector_store %arg9[%c0_21, %c0_22], %16 {strides = array<i32>} : memref<8x1xf32, #tpu.memory_space<vmem>>, vector<8x1xf32>,
    %c0_i32_23 = arith.constant 0 : i32
    %36 = arith.cmpi eq, %arg2, %c0_i32_23 : i32
    %37 = arith.extui %36 : i1 to i32
    %c0_i32_24 = arith.constant 0 : i32
    %38 = arith.cmpi ne, %37, %c0_i32_24 : i32
    scf.if %38 {
      %c0_25 = arith.constant 0 : index
      %c0_26 = arith.constant 0 : index
      %39 = vector.load %arg10[%c0_25, %c0_26] : memref<8x1xf32, #tpu.memory_space<vmem>>, vector<8x1xf32>
      %40 = tpu.reciprocal %39 {approx = true} : vector<8x1xf32> -> vector<8x1xf32>
      %c0_27 = arith.constant 0 : index
      %c0_28 = arith.constant 0 : index
      %41 = vector.load %arg11[%c0_27, %c0_28] : memref<8x128xf32, #tpu.memory_space<vmem>>, vector<8x128xf32>
      %42 = vector.broadcast %40 : vector<8x1xf32> to vector<8x128xf32>
      %43 = arith.mulf %41, %42 : vector<8x128xf32>
      %c0_29 = arith.constant 0 : index
      %c0_30 = arith.constant 0 : index
      %c0_31 = arith.constant 0 : index
      %44 = vector.load %arg7[%c0_29, %c0_30, %c0_31] : memref<1x8x128xf32, #tpu.memory_space<vmem>>, vector<1x8x128xf32>
      %45 = vector.shape_cast %44 : vector<1x8x128xf32> to vector<8x128xf32>
      %46 = vector.shape_cast %43 : vector<8x128xf32> to vector<1x8x128xf32>
      tpu.vector_store %arg7[%c0_29, %c0_30, %c0_31], %46 {strides = array<i32>} : memref<1x8x128xf32, #tpu.memory_space<vmem>>, vector<1x8x128xf32>,
    } else {
    }
    return
  }
  func.func @transform_0(%arg0: i32, %arg1: i32, %arg2: i32) -> (i32, i32, i32) {
    %c0_i32 = arith.constant 0 : i32
    %c0_i32_0 = arith.constant 0 : i32
    return %arg0, %arg1, %c0_i32 : i32, i32, i32
  }
  func.func @transform_1(%arg0: i32, %arg1: i32, %arg2: i32) -> (i32, i32, i32) {
    %c0_i32 = arith.constant 0 : i32
    %c0_i32_0 = arith.constant 0 : i32
    return %arg0, %arg2, %c0_i32 : i32, i32, i32
  }
  func.func @transform_2(%arg0: i32, %arg1: i32, %arg2: i32) -> (i32, i32) {
    %c0_i32 = arith.constant 0 : i32
    %c0_i32_0 = arith.constant 0 : i32
    %c0_i32_1 = arith.constant 0 : i32
    return %c0_i32, %c0_i32_0 : i32, i32
  }
  func.func @transform_3(%arg0: i32, %arg1: i32, %arg2: i32) -> (i32, i32) {
    %c0_i32 = arith.constant 0 : i32
    %c0_i32_0 = arith.constant 0 : i32
    %c0_i32_1 = arith.constant 0 : i32
    return %c0_i32, %c0_i32_0 : i32, i32
  }
  func.func @transform_4(%arg0: i32, %arg1: i32, %arg2: i32) -> (i32, i32, i32) {
    %c0_i32 = arith.constant 0 : i32
    %c0_i32_0 = arith.constant 0 : i32
    return %arg0, %arg1, %c0_i32 : i32, i32, i32
  }
}

</mosaic_0001>

<bundles_post_ra>
// kernel: tpu_custom_call.1
= control target key start
LH: loop header
LB: loop body
LE: loop exit
PB: predicated region body
PF: predicated region fallthrough
CT: control target
= control target key end

     0   :  { %s1448_s0 = inlined_call_operand.hbm [shape: bf16[2,8,32], index: 0, kind: input, shape index: {}]   ;;  %s1449_s1 = inlined_call_operand.hbm [shape: bf16[2,8,32], index: 1, kind: input, shape index: {}]   ;;  %s1450_s2 = inlined_call_operand.hbm [shape: bf16[32,128], index: 2, kind: input, shape index: {}]   ;;  %s1451_s3 = inlined_call_operand.hbm [shape: bf16[32,256], index: 3, kind: input, shape index: {}]   ;;  %s1452_s4 = inlined_call_operand.hbm [shape: f32[2,8,128], index: 4, kind: output, shape index: {}]  }
   0x1   :  { %1458 = sst [smem:[#allocation21_spill]] %s1450_s2 }
   0x2   :  { %1459 = sst [smem:[#allocation22_spill]] %s1451_s3 }
   0x3   :  { %9 = vsyncpa [#allocation7], 0 }
   0x4   :  { %11 = vsyncpa [#allocation7 + $0x1], 0 }
   0x5   :  { %12 = vsyncpa [#allocation10], 0 }
   0x6   :  { %14 = vsyncpa [#allocation10 + $0x1], 0 }
   0x7   :  { %15 = vsyncpa [#allocation13], 0 }
   0x8   :  { %16 = vsyncpa [#allocation8], 0 }
   0x9   :  { %18 = vsyncpa [#allocation8 + $0x1], 0  ;;  %s1147_s15 = smov 0   ;;  %s1149_s16 = smov 0  }
   0xa   :  { %s1151_s17 = smov 0   ;;  %s1153_s18 = smov 0  }
   0xb   :  { %s1155_s19 = smov 0   ;;  %s1157_s20 = smov 0  }
   0xc LB: > { %s1178_s21 = sadd.s32 4294967295, %s1107_s20   ;;  %s730_s22 = sadd.s32 4294967294, %s1107_s20   ;;  %s1107_s20 = sphi %s1157_s20, %s24_s20   ;;  %s1103_s19 = sphi %s1155_s19, %s1484_s19   ;;  %s1099_s18 = sphi %s1153_s18, %s1483_s18   ;;  %s1095_s17 = sphi %s1151_s17, %s1482_s17   ;;  %s1091_s16 = sphi %s1149_s16, %s1481_s16   ;;  %s1087_s15 = sphi %s1147_s15, %s1480_s15  }
   0xd   : > { %p65_p0 = scmp.ne.s32.totalorder %s1091_s16, %s1087_s15  ;;  %p1453_p1 = scmp.eq.s32.totalorder %s1178_s21, 0 }
   0xe   : > { %p167_p3 = scmp.eq.s32.totalorder %s730_s22, 1  ;;  %p731_p5 = scmp.ge.s32.totalorder %s1107_s20, 1 }
   0xf   : > { %p1187_p4 = por %p1453_p1, %p65_p0  ;;  %p174_p7 = scmp.lt.s32.totalorder %s1107_s20, 3 }
  0x10   : > { %p1192_p6 = por %p167_p3, %p65_p0  ;;  %s1109_s26 = smov [#allocation11]  }
  0x11   : > { %s1460_s23 = scalar_select %p1187_p4, 1, 0 }
  0x12   : > { %s1461_s24 = scalar_select %p1192_p6, 1, 0 }
  0x13   : > { %p1197_p8 = pnand %p731_p5, %p174_p7  ;;  %s186_s27 = sshll.u32 %s1109_s26, 4  ;;  %s1201_s27 = int_to_ptr.vmem [resolvable:$true] %s186_s27 }
  0x14   : > { %s1110_s29 = smov [#allocation12]   ;;  %s1464_s2 = sld [smem:[#allocation21_spill]] }
  0x15   : > { %s1462_s25 = scalar_select %p1197_p8, 1, 0 }
  0x16   : > { %p799_p9 = pneg %p1197_p8  ;;  %s199_s30 = sshll.u32 %s1110_s29, 4  ;;  %s1212_s30 = int_to_ptr.vmem [resolvable:$true] %s199_s30 }
  0x18   : > { %p1208_p11 = pnand %p799_p9, %p1453_p1 }
  0x1a   : > { %s897_s7 = scalar_lea.hbm %s1464_s2, 256  ;;  %p899_p13 = pneg %p1208_p11 }
  0x1b   : > { %p898_p12 = scmp.ne.s32.totalorder %s1464_s2, %s897_s7  ;;  %p904_p5 = scmp.lt.u32.totalorder %s897_s7, %s1464_s2 }
  0x1d   : > { %p900_p0 = pnand %p899_p13, %p898_p12 }
  0x1f   : > { %p901_p3 = pneg %p900_p0 }
  0x21   : > { %p906_p7 = pnand %p904_p5, %p901_p3 }
  0x23   : > { %909 = shalt.err (!%p906_p7)
}
  0x24   : > { %s910_s12 = scalar_lea.vmem %s1201_s27, 256  ;;  %p918_p2 = scmp.lt.s32.totalorder %s1201_s27, %s1201_s27 }
  0x25   : > { %p911_p9 = scmp.ne.s32.totalorder %s1201_s27, %s910_s12  ;;  %p919_p12 = scmp.lt.s32.totalorder %s910_s12, %s910_s12 }
  0x27   : > { %p913_p10 = pnand %p911_p9, %p899_p13  ;;  %p920_p0 = por %p919_p12, %p918_p2 }
  0x29   : > { %p914_p1 = pneg %p913_p10 }
  0x2b   : > { %p921_p6 = pnand %p920_p0, %p914_p1 }
  0x2d   : > { %924 = shalt.err (!%p921_p6)
}
  0x2e   : > { %s1111_s13 = smov 64   ;;  %s1112_s14 = smov 4  }
  0x2f   : > { %802 = dma.hbm_to_vmem [thread:$0]  (!%p1208_p11), %s1464_s2, 256, %s1201_s27, [#allocation10], %s1111_s13, %s1111_s13, %s1112_s14  }
  0x30   : > { %s1465_s3 = sld [smem:[#allocation22_spill]] }
  0x36   : > { %s925_s6 = scalar_lea.hbm %s1465_s3, 512 }
  0x37   : > { %p926_p2 = scmp.ne.s32.totalorder %s1465_s3, %s925_s6  ;;  %p932_p10 = scmp.lt.u32.totalorder %s925_s6, %s1465_s3 }
  0x39   : > { %p928_p1 = pnand %p926_p2, %p899_p13 }
  0x3b   : > { %p929_p6 = pneg %p928_p1 }
  0x3d   : > { %p934_p3 = pnand %p932_p10, %p929_p6 }
  0x3f   : > { %937 = shalt.err (!%p934_p3)
}
  0x40   : > { %s938_s27 = scalar_lea.vmem %s1212_s30, 512  ;;  %p946_p12 = scmp.lt.s32.totalorder %s1212_s30, %s1212_s30 }
  0x41   : > { %p939_p5 = scmp.ne.s32.totalorder %s1212_s30, %s938_s27  ;;  %p947_p0 = scmp.lt.s32.totalorder %s938_s27, %s938_s27 }
  0x43   : > { %p941_p7 = pnand %p939_p5, %p899_p13  ;;  %p948_p2 = por %p947_p0, %p946_p12 }
  0x45   : > { %p942_p9 = pneg %p941_p7 }
  0x47   : > { %p949_p1 = pnand %p948_p2, %p942_p9 }
  0x49   : > { %952 = shalt.err (!%p949_p1)
}
  0x4a   : > { %s1113_s11 = smov 128   ;;  %s1114_s12 = smov 8  }
  0x4b   : > { %805 = dma.hbm_to_vmem [thread:$0]  (!%p1208_p11), %s1465_s3, 512, %s1212_s30, [#allocation13], %s1113_s11, %s1113_s11, %s1114_s12  }
  0x4c   : > { %s43_s22 = sadd.s32 1, %s1103_s19  ;;  %s52_s26 = sadd.s32 1, %s1095_s17 }
  0x4d   : > { %p45_p13 = scmp.ge.s32.totalorder %s43_s22, 2  ;;  %p59_p6 = scmp.ne.s32.totalorder %s1095_s17, %s1091_s16 }
  0x4e   : > { %p60_p10 = scmp.eq.s32.totalorder %s1107_s20, 0  ;;  %p819_p3 = scmp.lt.s32.totalorder %s1107_s20, 2 }
  0x4f   : > { %s1486_s22 = smov (%p45_p13, %s43_s22), 0  ;;  %p1467_p7 = scmp.eq.s32.totalorder %s1178_s21, 1 }
  0x50   : > { %1466 = sst [smem:[#allocation20_spill]] %s1486_s22  ;;  %p61_p5 = por %p60_p10, %p59_p6 }
  0x51   : > { %p1276_p9 = por %p1467_p7, %p59_p6  ;;  %s47_s28 = ssub.s32 %s1103_s19, %s1486_s22 }
  0x52   : > { %s213_s5 = sand.u32 1, %s1095_s17   ;;  %p50_p12 = scmp.eq.s32.totalorder %s47_s28, 0 }
  0x53   : > { %s1468_s29 = scalar_select %p1276_p9, 1, 0 }
  0x54   : > { %s1283_s30 = sshll.u32 %s213_s5, 2  ;;  %s736_s6 = sshll.u32 %s1103_s19, 6 }
  0x55   : > { %s1287_s7 = scalar_select %p50_p12, %s1095_s17, %s52_s26  }
  0x56   : > { %s1292_s10 = scalar_lea.hbm %s1448_s0, %s736_s6  ;;  %s217_s27 = scalar_lea.vmem [#allocation6], %s1283_s30 }
  0x57   : > { %s225_s11 = sshll.u32 %s217_s27, 4  ;;  %p1297_p11 = pnand %p819_p3, %p61_p5  ;;  %s1301_s11 = int_to_ptr.vmem [resolvable:$true] %s225_s11 }
  0x58   : > { %s1306_s26 = scalar_lea.hbm %s1449_s1, %s736_s6  ;;  %s214_s28 = scalar_lea.sflag [#allocation7], %s213_s5 }
  0x59   : > { %s953_s8 = scalar_lea.hbm %s1292_s10, 64  ;;  %p955_p2 = pneg %p1297_p11 }
  0x5a   : > { %p954_p0 = scmp.ne.s32.totalorder %s1292_s10, %s953_s8  ;;  %s958_s2 = scalar_lea.hbm %s1448_s0, 128 }
  0x5b   : > { %p959_p6 = scmp.lt.u32.totalorder %s1292_s10, %s1448_s0  ;;  %p960_p10 = scmp.lt.u32.totalorder %s958_s2, %s953_s8 }
  0x5c   : > { %p956_p1 = pnand %p955_p2, %p954_p0  ;;  %p962_p5 = scmp.lt.u32.totalorder %s953_s8, %s1292_s10 }
  0x5d   : > { %p961_p3 = por %p960_p10, %p959_p6 }
  0x5e   : > { %p957_p13 = pneg %p956_p1 }
  0x5f   : > { %p963_p7 = por %p962_p5, %p961_p3 }
  0x61   : > { %p964_p12 = pnand %p963_p7, %p957_p13 }
  0x63   : > { %967 = shalt.err (!%p964_p12)
}
  0x64   : > { %s968_s5 = scalar_lea.vmem %s1301_s11, 64  ;;  %s1115_s6 = smov [#allocation6]  }
  0x65   : > { %p969_p0 = scmp.ne.s32.totalorder %s1301_s11, %s968_s5  ;;  %s973_s13 = sshll.u32 %s1115_s6, 4  ;;  %s974_s13 = int_to_ptr.vmem [resolvable:$false] %s973_s13 }
  0x66   : > { %s975_s3 = scalar_lea.vmem %s974_s13, 128  ;;  %p976_p4 = scmp.lt.s32.totalorder %s1301_s11, %s974_s13 }
  0x67   : > { %p971_p1 = pnand %p969_p0, %p955_p2  ;;  %p977_p6 = scmp.lt.s32.totalorder %s975_s3, %s968_s5 }
  0x69   : > { %p972_p9 = pneg %p971_p1  ;;  %p978_p10 = por %p977_p6, %p976_p4 }
  0x6b   : > { %p979_p3 = pnand %p978_p10, %p972_p9 }
  0x6d   : > { %982 = shalt.err (!%p979_p3)
}
  0x6e   : > { %809 = dma.hbm_to_vmem [thread:$0]  (!%p1297_p11), %s1292_s10, 64, %s1301_s11, %s214_s28  }
  0x6f   : > { %s232_s2 = sand.u32 1, %s1107_s20   ;;  %s236_s22 = scalar_lea.vmem [#allocation9], %s1283_s30 }
  0x70   : > { %s244_s14 = sshll.u32 %s236_s22, 4  ;;  %s233_s8 = scalar_lea.sflag [#allocation10], %s232_s2  ;;  %s245_s14 = int_to_ptr.vmem [resolvable:$true] %s244_s14 }
  0x71   : > { %s983_s9 = scalar_lea.hbm %s1306_s26, 64  ;;  %s988_s6 = scalar_lea.hbm %s1449_s1, 128 }
  0x72   : > { %p984_p4 = scmp.ne.s32.totalorder %s1306_s26, %s983_s9  ;;  %p989_p5 = scmp.lt.u32.totalorder %s1306_s26, %s1449_s1 }
  0x73   : > { %p990_p7 = scmp.lt.u32.totalorder %s988_s6, %s983_s9  ;;  %p992_p0 = scmp.lt.u32.totalorder %s983_s9, %s1306_s26 }
  0x74   : > { %p986_p9 = pnand %p984_p4, %p955_p2 }
  0x75   : > { %p991_p12 = por %p990_p7, %p989_p5 }
  0x76   : > { %p987_p13 = pneg %p986_p9 }
  0x77   : > { %p993_p1 = por %p992_p0, %p991_p12 }
  0x79   : > { %p994_p6 = pnand %p993_p1, %p987_p13 }
  0x7b   : > { %997 = shalt.err (!%p994_p6)
}
  0x7c   : > { %s998_s30 = scalar_lea.vmem %s245_s14, 64  ;;  %s1116_s10 = smov [#allocation9]  }
  0x7d   : > { %p999_p10 = scmp.ne.s32.totalorder %s245_s14, %s998_s30  ;;  %s1003_s11 = sshll.u32 %s1116_s10, 4  ;;  %s1004_s11 = int_to_ptr.vmem [resolvable:$false] %s1003_s11 }
  0x7e   : > { %s1005_s28 = scalar_lea.vmem %s1004_s11, 128  ;;  %p1006_p9 = scmp.lt.s32.totalorder %s245_s14, %s1004_s11 }
  0x7f   : > { %p1001_p3 = pnand %p999_p10, %p955_p2  ;;  %p1007_p8 = scmp.lt.s32.totalorder %s1005_s28, %s998_s30 }
  0x81   : > { %p1002_p4 = pneg %p1001_p3  ;;  %p1008_p5 = por %p1007_p8, %p1006_p9 }
  0x83   : > { %p1009_p7 = pnand %p1008_p5, %p1002_p4 }
  0x85   : > { %1012 = shalt.err (!%p1009_p7)
}
  0x86   : > { %812 = dma.hbm_to_vmem [thread:$0]  (!%p1297_p11), %s1306_s26, 64, %s245_s14, %s233_s8  }
  0x87   : > { %p1470_p13 = scmp.ne.s32.totalorder %s1462_s25, 0 }
  0x88   : > { %s1357_s2 = sand.u32 (!%p1470_p13), 1, %s1091_s16   ;;  %p1471_p8 = scmp.ne.s32.totalorder (!%p1470_p13), %s1460_s23, 0 }
  0x89   : > { %253 = sbr.rel (%p1470_p13) target bundleno = 1197 (0x4ad), region = 36  ;;  %s740_s22 = sshll.u32 (!%p1470_p13), %s1357_s2, 2 }
  0x8a   : > { %s256_s9 = scalar_lea.sflag (!%p1470_p13), [#allocation7], %s1357_s2  ;;  %s1361_s27 = scalar_lea.vmem (!%p1470_p13), [#allocation6], %s740_s22 }
  0x90   : > { %1066 = dma.done.wait (%p1471_p8), %s256_s9, 64  }
  0x91   : > { %1068 = vsyncadd (%p1471_p8), %s256_s9, 4294967232  ;;  %s264_s12 = sand.u32 1, %s1178_s21   ;;  %s1368_s26 = scalar_lea.vmem [#allocation9], %s740_s22 }
  0x92   : > { %s265_s25 = scalar_lea.sflag [#allocation10], %s264_s12 }
  0x93   : > { %1070 = dma.done.wait (%p1471_p8), %s265_s25, 64  }
  0x94   : > { %1072 = vsyncadd (%p1471_p8), %s265_s25, 4294967232  ;;  %p1472_p11 = scmp.eq.s32.totalorder %s1178_s21, 0 }
  0x96   : > { %1074 = dma.done.wait (%p1472_p11), [#allocation10], 256   ;;  %p1473_p2 = pmov %p1472_p11 }
  0x98   : > { %1076 = vsyncadd (%p1473_p2), [#allocation10], 4294967040  ;;  %p1474_p12 = pmov %p1473_p2 }
  0x99   : > { %p1475_p0 = pmov %p1473_p2 }
  0x9a   : > { %1078 = dma.done.wait (%p1474_p12), [#allocation13], 512  }
  0x9b   : > { %1080 = vsyncadd (%p1475_p0), [#allocation13], 4294966784  ;;  %v1117_v0 = vmov 0.0   ;;  %vm1118_vm0 = vmmov 0   ;;  %v1119_v1 = vmov 0   ;;  %v883_v2 = vld [vmem:[#allocation11] sm:$0xff]  }
  0x9c   : > { %765 = vmatprep.subr.bf16.mxu0 %v1117_v0  ;;  %769 = vmatprep.mubr.msk.bf16.mxu0 %vm1118_vm0, %v1117_v0  ;;  %v884_v3 = vld [vmem:[#allocation12 + $0x4] ss:$8 sps:$4 sm:$0xff]   ;;  %v886_v4 = vld [vmem:[#allocation12] ss:$8 sps:$4 sm:$0xff]   ;;  %v887_v5 = vld [vmem:[#allocation11 + $0x8] sm:$0xff]   ;;  %vm328_vm1 = vcmask 261120  }
  0x9d   : > { %440 = vmatprep.mubr.bf16.mxu1 %v1119_v1  ;;  %881 = vset.pattern.permute.xlu0 %v1119_v1  ;;  %v888_v6 = vld [vmem:[#allocation12 + $0x14] ss:$8 sps:$4 sm:$0xff]   ;;  %v890_v7 = vld [vmem:[#allocation12 + $0x10] ss:$8 sps:$4 sm:$0xff]   ;;  %v311_v8 = vld [vmem:[%s1361_s27] sm:$0xf] }
  0x9e   : > { %882 = vset.pattern.permute.xlu1 %v1119_v1  ;;  %766 = vmatpush3.bf16.msra.mxu0 %v883_v2  ;;  %v379_v9 = vld [vmem:[%s1368_s26] sm:$0xf]  ;;  %vm528_vm2 = vcmask 1043456   ;;  %vm375_vm3 = vcmask 7168   ;;  %v1120_v24 = vmov -inf   ;;  %vm493_vm4 = vcmask 64512  }
  0x9f   : > { %408 = vmatprep.subr.bf16.mxu1 %v884_v3  ;;  %767 = vmatprep.subr.bf16.mxu0 %v1117_v0  ;;  %376 = vst.msk [vmem:[#allocation3] sm:$0xff] %vm375_vm3, %v1120_v24  ;;  %377 = vst.msk [vmem:[#allocation4] sm:$0xff] %vm375_vm3, %v1117_v0  ;;  %s744_s21 = sshll.u32 %s1357_s2, 3  ;;  %s755_s23 = sshll.u32 %s1099_s18, 7 }
  0xa0   : > { %409 = vmatpush1.bf16.msra.mxu1 %v886_v4  ;;  %s305_s14 = scalar_lea.vmem [#allocation14], %s744_s21  ;;  %s1399_s13 = scalar_lea.hbm %s1452_s4, %s755_s23 }
  0xa1   : > { %410 = vmatprep.subr.bf16.mxu1 %v888_v6  ;;  %s603_s8 = sshll.u32 %s305_s14, 4  ;;  %s589_s3 = scalar_lea.sflag [#allocation8], %s1357_s2  ;;  %s1401_s8 = int_to_ptr.vmem [resolvable:$true] %s603_s8 }
  0xa2   : > { %768 = vmatpush3.bf16.msra.mxu0 %v887_v5  ;;  %s1013_s30 = scalar_lea.vmem %s1401_s8, 128  ;;  %p1476_p6 = scmp.ne.s32.totalorder %s1468_s29, 0 }
  0xa3   : > { %773 = vmatprep.subr.bf16.mxu0 %v1117_v0  ;;  %p1014_p1 = scmp.ne.s32.totalorder %s1401_s8, %s1013_s30  ;;  %s1121_s18 = smov [#allocation14]  }
  0xa4   : > { %411 = vmatpush1.bf16.msra.mxu1 %v890_v7  ;;  %s1017_s10 = sshll.u32 %s1121_s18, 4  ;;  %s1018_s10 = int_to_ptr.vmem [resolvable:$false] %s1017_s10 }
  0xa5   : > { %770 = vmatmul.mubr.msk.bf16.vlgmr.msra.gmra.mrb[0].mxu0 %vm328_vm1, %v311_v8  ;;  %779 = vmatprep.subr.bf16.mxu1 %v1117_v0  ;;  %p1015_p10 = pnand %p1014_p1, %p1476_p6  ;;  %s1019_s11 = scalar_lea.vmem %s1018_s10, 256 }
  0xa6   : > { %775 = vmatprep.mubr.msk.bf16.mxu0 %vm1118_vm0, %v1117_v0  ;;  %v492_v30 = vld [vmem:[#allocation3] sm:$0xff]  ;;  %v509_v42 = vld [vmem:[#allocation4] sm:$0xff]  ;;  %p1020_p4 = scmp.lt.s32.totalorder %s1401_s8, %s1018_s10  ;;  %p1021_p9 = scmp.lt.s32.totalorder %s1019_s11, %s1013_s30 }
  0xa7   : > { %752 = vmatmul.mubr.msk.bf16.vlgmr.msra.gmra.mrb[0].mxu1 %vm328_vm1, %v379_v9  ;;  %p1016_p3 = pneg %p1015_p10 }
  0xa8   : > { %781 = vmatprep.mubr.msk.bf16.mxu1 %vm1118_vm0, %v1117_v0  ;;  %p1022_p5 = por %p1021_p9, %p1020_p4 }
  0xaa   : > { %p1023_p7 = pnand %p1022_p5, %p1016_p3 }
 0x178   : > { %v366_v10 = vpop.f32.mrb[0].mxu0 }
 0x179   : > { %v372_v11 = vmul.f32 0.25, %v366_v10  ;;  %v771_v12 = vpop.f32.mrb[1].mxu0 }
 0x17a   : > { %v442_v13 = vpop.f32.mrb[0].mxu1  ;;  %v369_v14 = vpop.f32.mrb[2].mxu0 }
 0x17b   : > { %v373_v15 = vpack.c.bf16 %v372_v11, %v372_v11  ;;  %v449_v16 = vpack.c.bf16 %v442_v13, %v442_v13  ;;  %v444_v17 = vpop.f32.mrb[1].mxu1  ;;  %v772_v18 = vpop.f32.mrb[3].mxu0 }
 0x17c   : > { %v450_v19 = vpack.c.bf16 %v444_v17, %v444_v17  ;;  %v446_v20 = vpop.f32.mrb[2].mxu1 }
 0x17d   : > { %374 = vst [vmem:[#allocation2] sm:$0xf] %v373_v15  ;;  %v447_v21 = vpop.f32.mrb[3].mxu1  ;;  %774 = vmatpush3.bf16.xpose.msra.mxu0 %v449_v16 }
 0x17e   : > { %v530_v22 = vsel %vm528_vm2, %v450_v19, 0 }
 0x17f   : > { %780 = vmatpush3.bf16.msra.mxu1 %v530_v22 }
 0x184   : > { %v451_v23 = vld [vmem:[#allocation2] sm:$0xf] }
 0x185   : > { %776 = vmatmul.mubr.bf16.vlgmr.msra.gmra.mrb[4].mxu0 %v451_v23 }
 0x258   : > { %v486_v25 = vpop.f32.mrb[4].mxu0 }
 0x259   : > { %v777_v26 = vpop.f32.mrb[5].mxu0  ;;  %v494_v27 = vsel %vm493_vm4, %v486_v25, -inf }
 0x25a   : > { %495 = vmax.xlane.f32.xlu0 %v494_v27  ;;  %v489_v28 = vpop.f32.mrb[6].mxu0 }
 0x25b   : > { %v778_v29 = vpop.f32.mrb[7].mxu0 }
 0x2e7   : > { %v496_v31 = vpop.xlane.xlu0 %495 }
 0x2e8   : > { %v497_v32 = vmax.f32 %v492_v30, %v496_v31 }
 0x2ea   : > { %v498_v33 = vsub.f32 %v492_v30, %v497_v32  ;;  %574 = vst.msk [vmem:[#allocation3] sm:$0xff] %vm375_vm3, %v497_v32  ;;  %503 = vperm.xlu0 %881, %v497_v32  }
 0x2ec   : > { %v499_v40 = vmul.f32 1.442695, %v498_v33 }
 0x369   : > { %v504_v34 = vpop.permute.xlu0 %503 }
 0x36a   : > { %v506_v35 = vsub.f32 %v486_v25, %v504_v34 }
 0x36c   : > { %v507_v36 = vmul.f32 1.442695, %v506_v35 }
 0x36e   : > { %891 = vpow2.f32 %v507_v36 }
 0x36f   : > { %893 = vpow2.f32 %v499_v40 }
 0x378   : > { %v892_v37 = vpop.eup %891 }
 0x379   : > { %v511_v38 = vsel %vm493_vm4, %v892_v37, 0.0  ;;  %v524_v39 = vpack.c.bf16 %v892_v37, %v892_v37  ;;  %v894_v41 = vpop.eup %893 }
 0x37a   : > { %512 = vadd.xlane.f32.xlu1 %v511_v38  ;;  %v510_v43 = vmul.f32 %v894_v41, %v509_v42 }
 0x37b   : > { %782 = vmatmul.mubr.msk.bf16.vlgmr.msra.gmra.mrb[4].mxu1 %vm493_vm4, %v524_v39 }
 0x38b   : > { %520 = vperm.xlu1 %882, %v894_v41  }
 0x407   : > { %v513_v44 = vpop.xlane.xlu1 %512 }
 0x408   : > { %v514_v45 = vadd.f32 %v513_v44, %v510_v43 }
 0x40a   : > { %516 = vst.msk [vmem:[#allocation4] sm:$0xff] %vm375_vm3, %v514_v45 }
 0x40b   : > { %v521_v52 = vpop.permute.xlu1 %520 }
 0x40c   : > { %v523_v53 = vmul.f32 0.0, %v521_v52 }
 0x411   : > { %v578_v46 = vld [vmem:[#allocation4] sm:$0xff] }
 0x412   : > { %895 = vrcp.f32 %v578_v46 }
 0x41c   : > { %v896_v47 = vpop.eup %895 }
 0x41d   : > { %583 = vperm.xlu1 %882, %v896_v47  }
 0x44e   : > { %v566_v48 = vpop.f32.mrb[4].mxu1 }
 0x44f   : > { %v783_v49 = vpop.f32.mrb[5].mxu1  ;;  %v572_v54 = vadd.f32 %v566_v48, %v523_v53 }
 0x450   : > { %v569_v50 = vpop.f32.mrb[6].mxu1 }
 0x451   : > { %v784_v51 = vpop.f32.mrb[7].mxu1 }
 0x49c   : > { %v584_v55 = vpop.permute.xlu1 %583 }
 0x49d   : > { %v586_v56 = vmul.f32 %v584_v55, %v572_v54 }
 0x49f   : > { %587 = vst [vmem:[%s305_s14] sm:$0xff] %v586_v56 }
 0x4a0   : > { %1026 = shalt.err (!%p1023_p7)
}
 0x4a1   : > { %s1027_s28 = scalar_lea.hbm %s1399_s13, 128  ;;  %s1031_s9 = scalar_lea.hbm %s1452_s4, 256 }
 0x4a2   : > { %p1028_p13 = scmp.ne.s32.totalorder %s1399_s13, %s1027_s28  ;;  %p1032_p2 = scmp.lt.u32.totalorder %s1399_s13, %s1452_s4 }
 0x4a3   : > { %p1033_p12 = scmp.lt.u32.totalorder %s1031_s9, %s1027_s28  ;;  %p1035_p1 = scmp.lt.u32.totalorder %s1027_s28, %s1399_s13 }
 0x4a4   : > { %p1029_p8 = pnand %p1028_p13, %p1476_p6 }
 0x4a5   : > { %p1034_p0 = por %p1033_p12, %p1032_p2 }
 0x4a6   : > { %p1030_p11 = pneg %p1029_p8 }
 0x4a7   : > { %p1036_p10 = por %p1035_p1, %p1034_p0 }
 0x4a9   : > { %p1037_p3 = pnand %p1036_p10, %p1030_p11 }
 0x4ab   : > { %1040 = shalt.err (!%p1037_p3)
}
 0x4ac   : > { %797 = dma.vmem_to_hbm [thread:$0]  (%p1476_p6), %s1401_s8, 128, %s1399_s13, %s589_s3  }
 0x4ad PF: > { %s615_s25 = sand.u32 1, %s1087_s15   ;;  %p1477_p4 = scmp.ne.s32.totalorder %s1461_s24, 0 }
 0x4ae   : > { %p1478_p9 = scmp.ge.s32.totalorder %s1107_s20, 2  ;;  %s616_s26 = scalar_lea.sflag [#allocation8], %s615_s25 }
 0x4b0   : > { %p814_p5 = pnand %p1478_p9, %p1477_p4 }
 0x4b2   : > { %1082 = dma.done.wait (!%p814_p5), %s616_s26, 128  }
 0x4b3   : > { %1084 = vsyncadd (!%p814_p5), %s616_s26, 4294967168  ;;  %s24_s20 = sadd.s32 1, %s1107_s20   ;;  %s1479_s29 = sld [smem:[#allocation20_spill]] }
 0x4b4   : > { %p21_p7 = scmp.ge.s32.totalorder %s24_s20, 4   ;;  %s1480_s15 = smov %s1091_s16 }
 0x4b5   : > { %s1481_s16 = smov %s1095_s17  ;;  %s1482_s17 = smov %s1287_s7 }
 0x4b6   : > { %s1483_s18 = smov %s1103_s19  ;;  %23 = sbr.rel (!%p21_p7) target bundleno = 12 (0xc), region = 110 }
 0x4b9   : > { %s1484_s19 = smov %s1479_s29 }
 0x4bd   :  { %621 = vsyncpa [#allocation7], 1 }
 0x4be   :  { %623 = vsyncpa [#allocation7 + $0x1], 1 }
 0x4bf   :  { %624 = vsyncpa [#allocation10], 1 }
 0x4c0   :  { %626 = vsyncpa [#allocation10 + $0x1], 1 }
 0x4c1   :  { %627 = vsyncpa [#allocation13], 1 }
 0x4c2   :  { %628 = vsyncpa [#allocation8], 1 }
 0x4c3   :  { %630 = vsyncpa [#allocation8 + $0x1], 1 }

</bundles_post_ra>
